<compile_context>
chip_gen: v5e
topology: v5e:2x2
jax: 0.10.0
libtpu: 0.0.40
codegen_flags: <defaults>
</compile_context>

<pallas_src>
import jax
import jax.numpy as jnp
import numpy as np
from jax.experimental import pallas as pl
from jax.experimental.pallas import tpu as pltpu


# ----------------------------------------------------------------------------
# VMEM budgeting (generation-aware: 128 MiB on v5e/v6e, 64 MiB per TC on v7x).
# ----------------------------------------------------------------------------
def _vmem_limit_bytes():
    cap = 128 * 1024 * 1024
    try:
        info = pltpu.get_tpu_info()
        cap = int(getattr(info, "vmem_capacity_bytes", cap))
    except Exception:
        pass
    # Leave headroom for Mosaic-internal scratch and anything not counted below.
    return max(16 * 1024 * 1024, min((cap * 3) // 4, 112 * 1024 * 1024))


def _choose_lane_tile(n, bytes_per_lane, budget_bytes):
    """Largest 128-multiple lane tile (<= 2048) that divides n and whose double-buffered
    in+out blocks fit the VMEM budget; full extent for small / ragged n (toy shapes)."""
    if n % 128 != 0:
        return n
    best = 128
    t = 128
    while t <= min(n, 2048):
        if n % t == 0 and 2 * bytes_per_lane * t <= budget_bytes:
            best = t
        t += 128
    return best


# ----------------------------------------------------------------------------
# Kernel A: grouped pointwise projection  out[g] = W[g] @ x[g] + b[g]
# Serves to_q, to_kv (on the tap-flattened input) and to_out.
# ----------------------------------------------------------------------------
def _grouped_proj_kernel(x_ref, w_ref, b_ref, o_ref):
    # x_ref: (1, G, Cin_pg, NT)   w_ref: (G, Cout_pg, Cin_pg)   b_ref: (G, Cout_pg, 1)
    x = x_ref[0]
    w = w_ref[...]
    acc = jnp.einsum("goi,gin->gon", w, x, preferred_element_type=jnp.float32)
    o_ref[0] = (acc + b_ref[...]).astype(o_ref.dtype)


def _grouped_pointwise(x_bgcn, w_goc, b_go1, *, vmem_limit):
    """x: (B, G, Cin_pg, N), w: (G, Cout_pg, Cin_pg), b: (G, Cout_pg, 1) -> (B, G, Cout_pg, N)."""
    B, G, Cin, N = x_bgcn.shape
    Cout = w_goc.shape[1]
    bytes_per_lane = 4 * G * (Cin + Cout)                      # f32 input + output per lane
    nt = _choose_lane_tile(N, bytes_per_lane, vmem_limit // 2)
    grid = (B, N // nt)

    flops = 2 * B * G * Cout * Cin * N
    bytes_accessed = 4 * (x_bgcn.size + w_goc.size + b_go1.size + B * G * Cout * N)

    return pl.pallas_call(
        _grouped_proj_kernel,
        out_shape=jax.ShapeDtypeStruct((B, G, Cout, N), jnp.float32),
        grid_spec=pltpu.PrefetchScalarGridSpec(
            num_scalar_prefetch=0,
            grid=grid,
            in_specs=[
                pl.BlockSpec((1, G, Cin, nt), lambda b, n: (b, 0, 0, n)),
                # weight / bias index_maps ignore both grid axes -> fetched once, VMEM-resident
                pl.BlockSpec((G, Cout, Cin), lambda b, n: (0, 0, 0)),
                pl.BlockSpec((G, Cout, 1), lambda b, n: (0, 0, 0)),
            ],
            out_specs=pl.BlockSpec((1, G, Cout, nt), lambda b, n: (b, 0, 0, n)),
        ),
        compiler_params=pltpu.CompilerParams(
            dimension_semantics=("parallel", "parallel"),
            vmem_limit_bytes=vmem_limit,
        ),
        cost_estimate=pl.CostEstimate(
            flops=flops, transcendentals=0, bytes_accessed=bytes_accessed),
    )(x_bgcn, w_goc, b_go1)


# ----------------------------------------------------------------------------
# Kernel B: per-batch multi-head local-window attention, conv-native layouts.
# K/V are one VMEM-resident block (constant index map -> DMA'd once); the PyTorch
# k/v `.repeat(l,1,1)` pairing is a dynamic in-kernel index kvb = (b*l + li) % B.
# ----------------------------------------------------------------------------
def _make_attn_kernel(*, n_patches, patch, batch, scale):
    def kernel(q_ref, kv_ref, o_ref):
        # q_ref: (1, h, d, L)   kv_ref: (B, 2, h, d, Lk)   o_ref: (1, h, d, L)
        b = pl.program_id(0)
        # TODO(synk): switch the static unroll to lax.fori_loop for very large n_patches.
        for li in range(n_patches):
            # PyTorch `.repeat(l,1,1)` pairing: q patch (b, li) attends to kv batch
            # (b*l + li) % B (batch mixing is intentional; it matches the reference).
            kvb = (b * n_patches + li) % batch
            kv = kv_ref[kvb]                                    # (2, h, d, Lk)
            k_b = kv[0]                                         # (h, d, Lk)
            v_b = kv[1]                                         # (h, d, Lk)
            q_b = q_ref[0, :, :, li * patch:(li + 1) * patch]   # (h, d, p)

            s = jnp.einsum("hdp,hdj->hpj", q_b, k_b,
                           preferred_element_type=jnp.float32) * scale
            s = s - jnp.max(s, axis=-1, keepdims=True)
            e = jnp.exp(s)
            # Exact division keeps the 1e-4 tolerance margin
            # (pl.reciprocal(..., approx=True) would move it to the EUP if tolerances allow).
            attn = e / jnp.sum(e, axis=-1, keepdims=True)
            o = jnp.einsum("hdj,hpj->hdp", v_b, attn,
                           preferred_element_type=jnp.float32)
            o_ref[0, :, :, li * patch:(li + 1) * patch] = o.astype(o_ref.dtype)
    return kernel


def _local_global_attention(q_bhdl, kv_b2hdj, *, n_patches, patch, scale, vmem_limit):
    """q: (B, h, d, L), kv: (B, 2, h, d, Lk) -> (B, h, d, L)."""
    B, H, D, L = q_bhdl.shape
    J = kv_b2hdj.shape[-1]

    flops = 4 * B * n_patches * H * patch * J * D
    # q read + o write + K/V read exactly ONCE (constant block index -> no per-step re-DMA).
    bytes_accessed = 4 * (2 * q_bhdl.size + kv_b2hdj.size)

    return pl.pallas_call(
        _make_attn_kernel(n_patches=n_patches, patch=patch, batch=B, scale=scale),
        out_shape=jax.ShapeDtypeStruct((B, H, D, L), jnp.float32),
        grid_spec=pltpu.PrefetchScalarGridSpec(
            num_scalar_prefetch=0,
            grid=(B,),
            in_specs=[
                pl.BlockSpec((1, H, D, L), lambda b: (b, 0, 0, 0)),
                # whole K/V as one block, constant index map -> VMEM-resident across the grid
                pl.BlockSpec((B, 2, H, D, J), lambda b: (0, 0, 0, 0, 0)),
            ],
            out_specs=pl.BlockSpec((1, H, D, L), lambda b: (b, 0, 0, 0)),
        ),
        compiler_params=pltpu.CompilerParams(
            dimension_semantics=("parallel",),
            vmem_limit_bytes=vmem_limit,
        ),
        cost_estimate=pl.CostEstimate(
            flops=flops,
            transcendentals=B * n_patches * H * patch * J,
            bytes_accessed=bytes_accessed),
    )(q_bhdl, kv_b2hdj)


# ----------------------------------------------------------------------------
# Full forward pass
# ----------------------------------------------------------------------------
def loglo_attention_forward(x, wq, wkv, wo, bo, *,
                            heads, dim_head, k, local_patch_size, group):
    """x: (B, C, L); wq: (inner, C//G, 1); wkv: (2*inner, C//G, k); wo: (C, inner, 1); bo: (C,)."""
    B, C, L = x.shape
    h, d, p, G = heads, dim_head, local_patch_size, group
    inner = h * d
    assert L % p == 0 and L % k == 0
    assert C % G == 0 and inner % G == 0 and (2 * inner) % G == 0
    l = L // p
    Lk = L // k
    c_pg = C // G
    q_pg = inner // G
    kv_pg = (2 * inner) // G
    scale = float(d) ** -0.5
    vmem_limit = _vmem_limit_bytes()

    zeros_q = jnp.zeros((G, q_pg, 1), jnp.float32)
    zeros_kv = jnp.zeros((G, kv_pg, 1), jnp.float32)

    # ---- to_q: grouped 1x1 conv (applying it patch-wise == applying it position-wise on x).
    #      All reshapes are free (no transpose / no extra HBM pass).
    xq = x.reshape(B, G, c_pg, L)
    wq_g = wq[:, :, 0].reshape(G, q_pg, c_pg)
    q_conv = _grouped_pointwise(xq, wq_g, zeros_q, vmem_limit=vmem_limit)     # (B, G, q_pg, L)

    # ---- to_kv: grouped conv, kernel=k, stride=k  ==  grouped matmul over (C_pg * k).
    # TODO(synk): this transpose is the one remaining extra HBM pass of x; fold the k taps into
    #             the projection kernel (strided lane reads) or use allow_input_fusion.
    xkv = (x.reshape(B, G, c_pg, Lk, k)
             .transpose(0, 1, 2, 4, 3)
             .reshape(B, G, c_pg * k, Lk))
    wkv_g = wkv.reshape(G, kv_pg, c_pg * k)
    kv_conv = _grouped_pointwise(xkv, wkv_g, zeros_kv, vmem_limit=vmem_limit)  # (B, G, kv_pg, Lk)

    # ---- attention in conv-native layouts (reshape-only wrapper glue, no transposes) ----
    q_att = q_conv.reshape(B, h, d, L)           # free
    kv_att = kv_conv.reshape(B, 2, h, d, Lk)     # free; leading "2" == PyTorch chunk(2, dim=1)
    o_att = _local_global_attention(q_att, kv_att, n_patches=l, patch=p, scale=scale,
                                    vmem_limit=vmem_limit)                     # (B, h, d, L)

    # ---- to_out: 1x1 conv (+ bias).  Dropout is identity at inference.
    # TODO(synk): training-mode dropout is not implemented (eval-mode semantics only).
    wo_g = wo[:, :, 0].reshape(1, C, inner)
    bo_g = bo.reshape(1, C, 1)
    out = _grouped_pointwise(o_att.reshape(B, 1, inner, L), wo_g, bo_g,
                             vmem_limit=vmem_limit)                            # (B, 1, C, L)
    return out.reshape(B, C, L)


# ----------------------------------------------------------------------------
# Pure-JAX reference matching the PyTorch forward exactly (for validation).
# ----------------------------------------------------------------------------
def _reference_forward(x, wq, wkv, wo, bo, *, heads, dim_head, k, local_patch_size, group):
    B, C, L = x.shape
    h, d, p, G = heads, dim_head, local_patch_size, group
    inner = h * d
    l = L // p
    hi = jax.lax.Precision.HIGHEST

    def gconv1x1(t, w):
        cpg = t.shape[1] // G
        opg = w.shape[0] // G
        outs = []
        for g in range(G):
            outs.append(jnp.einsum("oc,bcl->bol", w[g * opg:(g + 1) * opg, :, 0],
                                   t[:, g * cpg:(g + 1) * cpg], precision=hi))
        return jnp.concatenate(outs, axis=1)

    def gconv_strided(t, w, stride):
        cpg = t.shape[1] // G
        opg = w.shape[0] // G
        tw = t.reshape(B, t.shape[1], L // stride, stride)
        outs = []
        for g in range(G):
            outs.append(jnp.einsum("ock,bctk->bot", w[g * opg:(g + 1) * opg],
                                   tw[:, g * cpg:(g + 1) * cpg], precision=hi))
        return jnp.concatenate(outs, axis=1)

    q_full = gconv1x1(x, wq)                       # (B, inner, L)
    kv_full = gconv_strided(x, wkv, k)             # (B, 2*inner, L//k)
    k_t, v_t = kv_full[:, :inner], kv_full[:, inner:]

    q = (q_full.reshape(B, inner, l, p).transpose(0, 2, 1, 3)
               .reshape(B * l, h, d, p).transpose(0, 1, 3, 2)
               .reshape(B * l * h, p, d))

    def to_bh(t):
        return t.reshape(B, h, d, -1).transpose(0, 1, 3, 2).reshape(B * h, -1, d)

    k_r, v_r = to_bh(k_t), to_bh(v_t)
    k_rep = jnp.tile(k_r, (l, 1, 1))
    v_rep = jnp.tile(v_r, (l, 1, 1))

    dots = jnp.einsum("bid,bjd->bij", q, k_rep, precision=hi) * (float(d) ** -0.5)
    attn = jax.nn.softmax(dots, axis=-1)
    out = jnp.einsum("bij,bjd->bid", attn, v_rep, precision=hi)
    out = (out.reshape(B, l, h, p, d).transpose(0, 2, 4, 1, 3).reshape(B, inner, L))
    out = jnp.einsum("oc,bcl->bol", wo[:, :, 0], out, precision=hi) + bo[None, :, None]
    return out


if __name__ == "__main__":
    # Small shapes consistent with the module's constraints
    # (C % group == 0, inner_dim % group == 0, L % local_patch_size == 0, L % k == 0).
    dim = 8            # C
    heads = 2
    dim_head = 8       # -> inner_dim = 16
    k_sz = 4           # to_kv kernel size / stride
    patch = 4          # local_patch_size
    group = 2
    B = 2
    L = 16
    inner = heads * dim_head

    key = jax.random.PRNGKey(0)
    kx, kq, kkv, ko, kb = jax.random.split(key, 5)
    x = jax.random.normal(kx, (B, dim, L), dtype=jnp.float32)
    wq = jax.random.normal(kq, (inner, dim // group, 1), dtype=jnp.float32) * 0.2
    wkv = jax.random.normal(kkv, (2 * inner, dim // group, k_sz), dtype=jnp.float32) * 0.2
    wo = jax.random.normal(ko, (dim, inner, 1), dtype=jnp.float32) * 0.2
    bo = jax.random.normal(kb, (dim,), dtype=jnp.float32) * 0.2

    out = loglo_attention_forward(
        x, wq, wkv, wo, bo,
        heads=heads, dim_head=dim_head, k=k_sz,
        local_patch_size=patch, group=group)
    out = jax.block_until_ready(out)

    ref = _reference_forward(
        x, wq, wkv, wo, bo,
        heads=heads, dim_head=dim_head, k=k_sz,
        local_patch_size=patch, group=group)

    np.testing.assert_allclose(np.asarray(out), np.asarray(ref), rtol=1e-3, atol=1e-4)
    assert out.shape == (B, dim, L)
    print("KERNEL_OK")
</pallas_src>

<mosaic_0001>
module attributes {stable_mosaic.version = 11 : i64} {
  func.func @_grouped_proj_kernel(%arg0: i32, %arg1: i32, %arg2: memref<1x2x4x16xf32, #tpu.memory_space<vmem>>, %arg3: memref<2x8x4xf32, #tpu.memory_space<vmem>>, %arg4: memref<2x8x1xf32, #tpu.memory_space<vmem>>, %arg5: memref<1x2x8x16xf32, #tpu.memory_space<vmem>>) attributes {dimension_semantics = [#tpu.dimension_semantics<parallel>, #tpu.dimension_semantics<parallel>], iteration_bounds = array<i64: 2, 1>, scalar_prefetch = 0 : i64, scratch_operands = 0 : i64, tpu.core_type = #tpu.core_type<tc>, window_params = [{transform_indices = @transform_0, window_bounds = array<i64: 1, 2, 4, 16>}, {pipeline_mode = #tpu.pipeline_mode<synchronous>, transform_indices = @transform_1, window_bounds = array<i64: 2, 8, 4>}, {pipeline_mode = #tpu.pipeline_mode<synchronous>, transform_indices = @transform_2, window_bounds = array<i64: 2, 8, 1>}, {transform_indices = @transform_3, window_bounds = array<i64: 1, 2, 8, 16>}]} {
    %c0 = arith.constant 0 : index
    %c0_0 = arith.constant 0 : index
    %c0_1 = arith.constant 0 : index
    %c0_2 = arith.constant 0 : index
    %0 = vector.load %arg2[%c0, %c0_0, %c0_1, %c0_2] : memref<1x2x4x16xf32, #tpu.memory_space<vmem>>, vector<1x2x4x16xf32>
    %1 = vector.shape_cast %0 : vector<1x2x4x16xf32> to vector<2x4x16xf32>
    %c0_3 = arith.constant 0 : index
    %c0_4 = arith.constant 0 : index
    %c0_5 = arith.constant 0 : index
    %2 = vector.load %arg3[%c0_3, %c0_4, %c0_5] : memref<2x8x4xf32, #tpu.memory_space<vmem>>, vector<2x8x4xf32>
    "tpu.trace_start"() <{level = 10 : i32, message = "goi,gin->gon"}> : () -> ()
    %cst = arith.constant dense<0.000000e+00> : vector<2x8x16xf32>
    %3 = tpu.matmul %2, %1, %cst {dimension_numbers = #tpu.dot_dimension_numbers<[2], [1], [1], [2], [0, 0, 0, 1, 1, 2], [0], [0]>} : vector<2x8x4xf32>, vector<2x4x16xf32>, vector<2x8x16xf32> -> vector<2x8x16xf32>
    "tpu.trace_stop"() : () -> ()
    %c0_6 = arith.constant 0 : index
    %c0_7 = arith.constant 0 : index
    %c0_8 = arith.constant 0 : index
    %4 = vector.load %arg4[%c0_6, %c0_7, %c0_8] : memref<2x8x1xf32, #tpu.memory_space<vmem>>, vector<2x8x1xf32>
    %5 = vector.broadcast %4 : vector<2x8x1xf32> to vector<2x8x16xf32>
    %6 = arith.addf %3, %5 : vector<2x8x16xf32>
    %c0_9 = arith.constant 0 : index
    %c0_10 = arith.constant 0 : index
    %c0_11 = arith.constant 0 : index
    %c0_12 = arith.constant 0 : index
    %7 = vector.load %arg5[%c0_9, %c0_10, %c0_11, %c0_12] : memref<1x2x8x16xf32, #tpu.memory_space<vmem>>, vector<1x2x8x16xf32>
    %8 = vector.shape_cast %7 : vector<1x2x8x16xf32> to vector<2x8x16xf32>
    %9 = vector.shape_cast %6 : vector<2x8x16xf32> to vector<1x2x8x16xf32>
    tpu.vector_store %arg5[%c0_9, %c0_10, %c0_11, %c0_12], %9 {strides = array<i32>} : memref<1x2x8x16xf32, #tpu.memory_space<vmem>>, vector<1x2x8x16xf32>,
    return
  }
  func.func @transform_0(%arg0: i32, %arg1: i32) -> (i32, i32, i32, i32) {
    %c0_i32 = arith.constant 0 : i32
    %c0_i32_0 = arith.constant 0 : i32
    %c0_i32_1 = arith.constant 0 : i32
    return %arg0, %c0_i32, %c0_i32_0, %arg1 : i32, i32, i32, i32
  }
  func.func @transform_1(%arg0: i32, %arg1: i32) -> (i32, i32, i32) {
    %c0_i32 = arith.constant 0 : i32
    %c0_i32_0 = arith.constant 0 : i32
    %c0_i32_1 = arith.constant 0 : i32
    %c0_i32_2 = arith.constant 0 : i32
    return %c0_i32, %c0_i32_0, %c0_i32_1 : i32, i32, i32
  }
  func.func @transform_2(%arg0: i32, %arg1: i32) -> (i32, i32, i32) {
    %c0_i32 = arith.constant 0 : i32
    %c0_i32_0 = arith.constant 0 : i32
    %c0_i32_1 = arith.constant 0 : i32
    %c0_i32_2 = arith.constant 0 : i32
    return %c0_i32, %c0_i32_0, %c0_i32_1 : i32, i32, i32
  }
  func.func @transform_3(%arg0: i32, %arg1: i32) -> (i32, i32, i32, i32) {
    %c0_i32 = arith.constant 0 : i32
    %c0_i32_0 = arith.constant 0 : i32
    %c0_i32_1 = arith.constant 0 : i32
    return %arg0, %c0_i32, %c0_i32_0, %arg1 : i32, i32, i32, i32
  }
}

</mosaic_0001>

<bundles_post_ra>
// kernel: tpu_custom_call.1
= control target key start
LH: loop header
LB: loop body
LE: loop exit
PB: predicated region body
PF: predicated region fallthrough
CT: control target
= control target key end

     0   :  { %8 = vsyncpa [#allocation3], 0  ;;  %s652_s0 = inlined_call_operand.vmem [shape: f32[2,2,4,16], index: 0, kind: input, shape index: {}]   ;;  %s653_s1 = inlined_call_operand.vmem [shape: f32[2,8,4], index: 1, kind: input, shape index: {}]   ;;  %s654_s2 = inlined_call_operand.vmem [shape: f32[2,8,1], index: 2, kind: input, shape index: {}]   ;;  %s655_s3 = inlined_call_operand.hbm [shape: f32[2,2,8,16], index: 3, kind: output, shape index: {}]  }
   0x1   :  { %10 = vsyncpa [#allocation3 + $0x1], 0  ;;  %s543_s12 = smov 0   ;;  %s545_s13 = smov 0  }
   0x2   :  { %s547_s14 = smov 0   ;;  %s549_s15 = smov 0  }
   0x3   :  { %s551_s16 = smov 0   ;;  %s553_s17 = smov 0  }
   0x4 LB: > { %s362_s18 = sadd.s32 4294967295, %s518_s17   ;;  %s363_s19 = sadd.s32 4294967294, %s518_s17   ;;  %s518_s17 = sphi %s553_s17, %s16_s17   ;;  %s514_s16 = sphi %s551_s16, %s662_s16   ;;  %s510_s15 = sphi %s549_s15, %s661_s15   ;;  %s506_s14 = sphi %s547_s14, %s660_s14   ;;  %s502_s13 = sphi %s545_s13, %s659_s13   ;;  %s498_s12 = sphi %s543_s12, %s658_s12  }
   0x5   : > { %s28_s20 = sadd.s32 1, %s514_s16  ;;  %s107_s21 = sadd.s32 1, %s506_s14 }
   0x6   : > { %p30_p0 = scmp.ge.s32.totalorder %s28_s20, 2  ;;  %p117_p1 = scmp.ne.s32.totalorder %s506_s14, %s502_s13 }
   0x7   : > { %p118_p2 = scmp.eq.s32.totalorder %s362_s18, 1  ;;  %p123_p3 = scmp.ne.s32.totalorder %s502_s13, %s498_s12 }
   0x8   : > { %s664_s20 = smov (%p30_p0, %s28_s20), 0  ;;  %p124_p5 = scmp.eq.s32.totalorder %s363_s19, 1 }
   0x9   : > { %p583_p4 = por %p118_p2, %p117_p1  ;;  %s102_s23 = ssub.s32 %s514_s16, %s664_s20 }
   0xa   : > { %p366_p6 = scmp.ge.s32.totalorder %s518_s17, 1  ;;  %p105_p7 = scmp.eq.s32.totalorder %s102_s23, 0 }
   0xb   : > { %p590_p8 = por %p124_p5, %p123_p3  ;;  %p159_p9 = scmp.lt.s32.totalorder %s518_s17, 3 }
   0xc   : > { %s596_s25 = scalar_select %p105_p7, %s506_s14, %s107_s21  }
   0xd   : > { %p160_p10 = pnand %p366_p6, %p159_p9 }
   0xe   : > { %p186_p11 = scmp.lt.s32.totalorder (!%p160_p10), %s510_s15, 1  ;;  %s183_s18 = sand.u32 (!%p160_p10), 1, %s502_s13  }
   0xf   : > { %163 = sbr.rel (%p160_p10) target bundleno = 159 (0x9f), region = 32  ;;  %s367_s19 = sshll.u32 (!%p160_p10), %s183_s18, 4 }
  0x10   : > { %s380_s21 = sshll.u32 (!%p160_p10), %s510_s15, 4  ;;  %s268_s4 = scalar_lea.sflag (!%p160_p10), [#allocation3], %s183_s18 }
  0x11   : > { %s280_s27 = scalar_lea.hbm (!%p160_p10), %s655_s3, %s380_s21  ;;  %s460_s8 = scalar_lea.hbm (!%p160_p10), %s655_s3, 32 }
  0x12   : > { %s283_s30 = sshll.u32 (!%p160_p10), %s280_s27, 4  ;;  %s284_s30 = int_to_ptr.hbm [resolvable:$true] %s283_s30 }
  0x14   : > { %v198_v0 = vld [vmem:[%s654_s2] sm:$0xff]  ;;  %v520_v1 = vmov 0   ;;  %s187_s28 = scalar_select %p186_p11, %s510_s15, 1  ;;  %vm214_vm0 = vcmask 1043456   ;;  %vm210_vm1 = vcmask 31744   ;;  %v197_v3 = vld [vmem:[%s653_s1 + $0x8] sm:$0xff] }
  0x15   : > { %439 = vset.pattern.permute.xlu0 %v520_v1  ;;  %v196_v2 = vld [vmem:[%s653_s1] sm:$0xff]  ;;  %v199_v6 = vld [vmem:[%s654_s2 + $0x8] sm:$0xff]  ;;  %vm264_vm2 = vcmask 130048   ;;  %s454_s15 = sshra.s32 %s284_s30, 4  ;;  %s455_s15 = int_to_ptr.hbm [resolvable:$true] %s454_s15 }
  0x16   : > { %202 = vperm.xlu0 %439, %v198_v0   ;;  %s379_s29 = sshll.u32 %s187_s28, 3  ;;  %s185_s28 = scalar_lea.vmem [#allocation2], %s367_s19 }
  0x17   : > { %s193_s5 = scalar_lea.vmem %s652_s0, %s379_s29  ;;  %s281_s29 = sshll.u32 %s185_s28, 4  ;;  %s282_s29 = int_to_ptr.vmem [resolvable:$true] %s281_s29 }
  0x18   : > { %v194_v4 = vld [vmem:[%s193_s5] sm:$0xf]  ;;  %v195_v5 = vld [vmem:[%s193_s5 + $0x4] sm:$0xf]  ;;  %s456_s5 = scalar_lea.hbm %s455_s15, 16  ;;  %p461_p1 = scmp.lt.s32.totalorder %s455_s15, %s655_s3 }
  0x19   : > { %370 = vmatpush.msk.msra.mxu0 %vm214_vm0, %v194_v4  ;;  %372 = vmatpush.msk.msra.mxu1 %vm214_vm0, %v195_v5  ;;  %p457_p12 = scmp.ne.s32.totalorder %s455_s15, %s456_s5  ;;  %p462_p2 = scmp.lt.s32.totalorder %s460_s8, %s456_s5 }
  0x1a   : > { %371 = vmatmul.msk.f32.vlgmr.msra.gmra.mxu0 %vm210_vm1, %v196_v2  ;;  %373 = vmatmul.msk.f32.vlgmr.msra.gmra.mxu1 %vm210_vm1, %v197_v3 }
  0x1b   : > { %p458_p13 = pnand %p457_p12, %p583_p4  ;;  %p463_p3 = por %p462_p2, %p461_p1 }
  0x1d   : > { %p459_p0 = pneg %p458_p13 }
  0x1e   : > { %207 = vperm.xlu0 %439, %v199_v6  }
  0x1f   : > { %p464_p5 = pnand %p463_p3, %p459_p0 }
  0x88   : > { %v203_v7 = vpop.permute.xlu0 %202 }
  0x90   : > { %v208_v8 = vpop.permute.xlu0 %207 }
  0x97   : > { %v235_v9 = vpop.f32.mrf.mxu0  ;;  %v261_v10 = vpop.f32.mrf.mxu1 }
  0x98   : > { %v236_v11 = vadd.f32 %v235_v9, %v203_v7  ;;  %v262_v12 = vadd.f32 %v261_v10, %v208_v8 }
  0x9a   : > { %265 = vst.msk [vmem:[%s185_s28] sm:$0xff] %vm264_vm2, %v236_v11 }
  0x9b   : > { %266 = vst.msk [vmem:[%s185_s28 + $0x8] sm:$0xff] %vm264_vm2, %v262_v12 }
  0x9c   : > { %467 = shalt.err (!%p464_p5)
}
  0x9d   : > { %s521_s11 = smov 128   ;;  %s522_s18 = smov 8  }
  0x9e   : > { %381 = dma.vmem_to_hbm [thread:$0]  (%p583_p4), %s282_s29, 256, %s284_s30, %s268_s4, %s521_s11, %s521_s11, %s522_s18  }
  0x9f PF: > { %p387_p6 = scmp.ge.s32.totalorder %s518_s17, 2  ;;  %s298_s19 = sand.u32 1, %s498_s12  }
  0xa0   : > { %s299_s21 = scalar_lea.sflag [#allocation3], %s298_s19 }
  0xa1   : > { %p384_p7 = pnand %p387_p6, %p590_p8 }
  0xa3   : > { %p385_p9 = pneg %p384_p7 }
  0xa5   : > { %493 = dma.done.wait (%p385_p9), %s299_s21, 256  }
  0xa6   : > { %495 = vsyncadd (%p385_p9), %s299_s21, 4294967040  ;;  %s16_s17 = sadd.s32 1, %s518_s17   ;;  %s658_s12 = smov %s502_s13 }
  0xa7   : > { %p13_p10 = scmp.ge.s32.totalorder %s16_s17, 4   ;;  %s659_s13 = smov %s506_s14 }
  0xa8   : > { %s660_s14 = smov %s596_s25  ;;  %s661_s15 = smov %s514_s16 }
  0xa9   : > { %s662_s16 = smov %s664_s20  ;;  %15 = sbr.rel (!%p13_p10) target bundleno = 4 (0x4), region = 67 }
  0xae   :  { %305 = vsyncpa [#allocation3], 1 }
  0xaf   :  { %307 = vsyncpa [#allocation3 + $0x1], 1 }

</bundles_post_ra>
